<compile_context>
chip_gen: v5e
topology: v5e:2x2
jax: 0.10.0
libtpu: 0.0.40
codegen_flags: <defaults>
</compile_context>

<pallas_src>
import functools

import jax
import jax.numpy as jnp
from jax.experimental import pallas as pl
from jax.experimental.pallas import tpu as pltpu


def _round_up(v, m):
    return (v + m - 1) // m * m


# ---------------------------------------------------------------------------
# Kernel: whole 6-layer MLP on one (TB, d_in_p) batch tile, weights VMEM-resident.
# ---------------------------------------------------------------------------
def _ae_kernel(x_ref,
               w1_ref, b1_ref, w2_ref, b2_ref, w3_ref, b3_ref,
               w4_ref, b4_ref, w5_ref, b5_ref, w6_ref, b6_ref,
               o_ref):
    def layer(h, w_ref, b_ref):
        w = w_ref[...]
        if w.dtype == jnp.float32:
            # Explicit precision: do not let the MXU silently lower to bf16 passes.
            y = jnp.dot(h, w, preferred_element_type=jnp.float32,
                        precision=jax.lax.Precision.HIGHEST)
        else:
            # bf16 x bf16 -> f32 accumulate on the MXU; bias/ReLU stay f32 (VPU).
            y = jnp.dot(h.astype(w.dtype), w,
                        preferred_element_type=jnp.float32)
        y = y + b_ref[...]          # (1, Dout) broadcasts over rows, f32
        return jnp.maximum(y, 0.0)  # ReLU, f32

    h = x_ref[...]
    h = layer(h, w1_ref, b1_ref)
    h = layer(h, w2_ref, b2_ref)
    h = layer(h, w3_ref, b3_ref)
    h = layer(h, w4_ref, b4_ref)
    h = layer(h, w5_ref, b5_ref)
    h = layer(h, w6_ref, b6_ref)
    o_ref[...] = h


# ---------------------------------------------------------------------------
# One-time parameter preparation (hoisted out of the per-call path).
# Hidden widths are zero-padded to 128 lanes; the edge dims (W1 input rows and
# W6 output cols) are zero-padded to round_up(d_in, 128) so the x/out slabs are
# lane-dense.  Zero weight + zero bias -> zero activation, exact for a ReLU MLP.
# Weights are stored in bf16 (MXU-native), biases stay f32.
# ---------------------------------------------------------------------------
def prepare_params(params, n, weight_dtype=jnp.bfloat16):
    d_in = n * n * 3
    d_in_p = _round_up(d_in, 128)
    dims = [d_in, 120, 40, 4, 40, 120, d_in]
    dims_p = [d_in_p, 128, 128, 128, 128, 128, d_in_p]

    padded = []
    for i, (w, b) in enumerate(params):
        w = jnp.asarray(w, jnp.float32)
        b = jnp.asarray(b, jnp.float32)
        wp = jnp.zeros((dims_p[i], dims_p[i + 1]), jnp.float32)
        wp = wp.at[:dims[i], :dims[i + 1]].set(w)
        bp = jnp.zeros((1, dims_p[i + 1]), jnp.float32)
        bp = bp.at[0, :dims[i + 1]].set(b)
        padded.extend([wp.astype(weight_dtype), bp])
    return tuple(jax.device_put(p) for p in padded)


# ---------------------------------------------------------------------------
# Generation-aware batch-tile selection.
#   * Biggest tile that keeps the 2-in + 2-out pipelined f32 buffers within a
#     VMEM budget (tighter on v7x: 64 MiB physical per TC).
#   * On v7x (2 TensorCores) prefer a grid of >= 2 steps so
#     dimension_semantics=("parallel",) actually uses both cores.
#   * On v5e/v6e (1 TC) take the single biggest tile (fewest grid steps).
# ---------------------------------------------------------------------------
def _default_block_b(B, d_in_p):
    kind = ""
    try:
        kind = jax.devices()[0].device_kind.lower()
    except Exception:
        pass
    multi_tc = "7" in kind                      # v7x: 2 TensorCores / chip
    io_budget = (24 << 20) if multi_tc else (48 << 20)
    Bp8 = _round_up(B, 8)
    for tb in (512, 256, 128, 64, 32, 16, 8):
        if tb > Bp8 and tb != 8:
            continue
        if 4 * tb * d_in_p * 4 > io_budget:     # 2 in + 2 out pipelined f32 bufs
            continue
        if multi_tc:
            if Bp8 >= 2 * tb:                   # >= 2 grid steps -> both TCs busy
                return tb
        else:
            return tb                           # biggest tile, fewest grid steps
    return 8


def _vmem_limit_bytes(block_b, d_in_p, padded_params, single_buffer_weights):
    wmul = 1 if single_buffer_weights else 2
    weight_bytes = sum(int(p.size) * p.dtype.itemsize
                       for p in padded_params) * wmul
    io_bytes = 4 * block_b * d_in_p * 4         # 2 in + 2 out pipelined f32 bufs
    act_bytes = 4 * block_b * 128 * 4           # hidden activations / temporaries
    total = weight_bytes + io_bytes + act_bytes
    return max(32 << 20, min(int(total * 1.5) + (2 << 20), 100 << 20))


# ---------------------------------------------------------------------------
# Forward pass.
# ---------------------------------------------------------------------------
@functools.partial(jax.jit,
                   static_argnames=("n", "block_b", "single_buffer_weights"))
def autoencoder_forward(x, padded_params, n, block_b=None,
                        single_buffer_weights=True):
    """x: (B, n, n, 3).  padded_params: output of prepare_params()."""
    B = x.shape[0]
    d_in = n * n * 3
    d_in_p = _round_up(d_in, 128)
    x_flat = x.reshape(B, d_in).astype(jnp.float32)

    if block_b is None:
        block_b = _default_block_b(B, d_in_p)
    assert block_b % 8 == 0, "batch tile must be sublane (8) aligned"

    Bp = _round_up(B, block_b)
    pad_b, pad_d = Bp - B, d_in_p - d_in
    if pad_b or pad_d:                  # pad once: lane-dense, tile-aligned slab
        x_flat = jnp.pad(x_flat, ((0, pad_b), (0, pad_d)))

    grid = (Bp // block_b,)

    # x / out: tiled over the batch axis, lane-dense (multiple-of-128) features.
    x_spec = pl.BlockSpec((block_b, d_in_p), lambda i: (i, 0))
    out_spec = pl.BlockSpec((block_b, d_in_p), lambda i: (i, 0))

    # Weights / biases: constant block index -> VMEM-resident across grid steps.
    # Single-buffered (no re-DMA after step 0, so double-buffering is waste).
    if single_buffer_weights:
        const = lambda shp: pl.BlockSpec(shp, lambda i: (0, 0),
                                         pipeline_mode=pl.Buffered(1))
    else:
        const = lambda shp: pl.BlockSpec(shp, lambda i: (0, 0))
    w_specs = [const(p.shape) for p in padded_params]

    vmem_limit = _vmem_limit_bytes(block_b, d_in_p, padded_params,
                                   single_buffer_weights)

    out_p = pl.pallas_call(
        _ae_kernel,
        out_shape=jax.ShapeDtypeStruct((Bp, d_in_p), jnp.float32),
        grid=grid,
        in_specs=[x_spec] + w_specs,
        out_specs=out_spec,
        compiler_params=pltpu.CompilerParams(
            dimension_semantics=("parallel",),
            vmem_limit_bytes=vmem_limit,
        ),
    )(x_flat, *padded_params)

    out = out_p[:B, :d_in] if (pad_b or pad_d) else out_p
    return out.reshape(B, n, n, 3)


# ---------------------------------------------------------------------------
# Deterministic init matching PyTorch nn.Linear default (U[-1/sqrt(fan_in), +]).
# ---------------------------------------------------------------------------
def init_params(key, n):
    dims = [n * n * 3, 120, 40, 4, 40, 120, n * n * 3]
    params = []
    for i in range(6):
        key, kw, kb = jax.random.split(key, 3)
        bound = 1.0 / jnp.sqrt(jnp.float32(dims[i]))
        w = jax.random.uniform(kw, (dims[i], dims[i + 1]), jnp.float32,
                               minval=-bound, maxval=bound)
        b = jax.random.uniform(kb, (dims[i + 1],), jnp.float32,
                               minval=-bound, maxval=bound)
        params.append((w, b))
    return params


def _reference_forward(x, params, n, weight_dtype=jnp.float32):
    """Pure-JAX reference; with weight_dtype=bf16 it mirrors the kernel's
    quantization (bf16 matmul inputs, f32 accumulate, f32 bias/ReLU)."""
    B = x.shape[0]
    h = x.reshape(B, n * n * 3).astype(jnp.float32)
    for (w, b) in params:
        w = jnp.asarray(w, jnp.float32)
        b = jnp.asarray(b, jnp.float32)
        if weight_dtype == jnp.float32:
            y = jnp.dot(h, w, preferred_element_type=jnp.float32,
                        precision=jax.lax.Precision.HIGHEST)
        else:
            y = jnp.dot(h.astype(weight_dtype), w.astype(weight_dtype),
                        preferred_element_type=jnp.float32)
        h = jnp.maximum(y + b, 0.0)
    return h.reshape(B, n, n, 3)


if __name__ == "__main__":
    n = 4            # player_sight (small synthetic value) -> d_in = 48
    batch = 32       # small batch; block_b auto-chosen per TPU generation
    key = jax.random.PRNGKey(0)
    k_x, k_p = jax.random.split(key)

    x = jax.random.uniform(k_x, (batch, n, n, 3), jnp.float32)
    params = init_params(k_p, n)
    padded_params = prepare_params(params, n)   # one-time, outside the call path

    try:
        out = jax.block_until_ready(autoencoder_forward(x, padded_params, n))
    except Exception:
        # Fallback for jax versions without BlockSpec(pipeline_mode=Buffered(1)).
        out = jax.block_until_ready(
            autoencoder_forward(x, padded_params, n,
                                single_buffer_weights=False))

    assert out.shape == (batch, n, n, 3)

    # Tight check vs. a reference that applies the same bf16 quantization.
    ref_q = _reference_forward(x, params, n, weight_dtype=jnp.bfloat16)
    assert jnp.allclose(out, ref_q, atol=1e-4, rtol=1e-4), \
        float(jnp.max(jnp.abs(out - ref_q)))

    # Loose sanity check vs. the full-f32 reference (bf16 MXU rounding budget).
    ref_f32 = _reference_forward(x, params, n, weight_dtype=jnp.float32)
    assert jnp.allclose(out, ref_f32, atol=1e-1, rtol=1e-1)

    print("KERNEL_OK")
</pallas_src>

<mosaic_0001>
module attributes {stable_mosaic.version = 11 : i64} {
  func.func @_ae_kernel(%arg0: i32, %arg1: memref<32x128xf32, #tpu.memory_space<vmem>>, %arg2: memref<128x128xbf16, #tpu.memory_space<vmem>>, %arg3: memref<1x128xf32, #tpu.memory_space<vmem>>, %arg4: memref<128x128xbf16, #tpu.memory_space<vmem>>, %arg5: memref<1x128xf32, #tpu.memory_space<vmem>>, %arg6: memref<128x128xbf16, #tpu.memory_space<vmem>>, %arg7: memref<1x128xf32, #tpu.memory_space<vmem>>, %arg8: memref<128x128xbf16, #tpu.memory_space<vmem>>, %arg9: memref<1x128xf32, #tpu.memory_space<vmem>>, %arg10: memref<128x128xbf16, #tpu.memory_space<vmem>>, %arg11: memref<1x128xf32, #tpu.memory_space<vmem>>, %arg12: memref<128x128xbf16, #tpu.memory_space<vmem>>, %arg13: memref<1x128xf32, #tpu.memory_space<vmem>>, %arg14: memref<32x128xf32, #tpu.memory_space<vmem>>) attributes {dimension_semantics = [#tpu.dimension_semantics<parallel>], iteration_bounds = array<i64: 1>, scalar_prefetch = 0 : i64, scratch_operands = 0 : i64, tpu.core_type = #tpu.core_type<tc>, window_params = [{transform_indices = @transform_0, window_bounds = array<i64: 32, 128>}, {pipeline_mode = #tpu.pipeline_mode<synchronous>, transform_indices = @transform_1, window_bounds = array<i64: 128, 128>}, {pipeline_mode = #tpu.pipeline_mode<synchronous>, transform_indices = @transform_2, window_bounds = array<i64: 1, 128>}, {pipeline_mode = #tpu.pipeline_mode<synchronous>, transform_indices = @transform_3, window_bounds = array<i64: 128, 128>}, {pipeline_mode = #tpu.pipeline_mode<synchronous>, transform_indices = @transform_4, window_bounds = array<i64: 1, 128>}, {pipeline_mode = #tpu.pipeline_mode<synchronous>, transform_indices = @transform_5, window_bounds = array<i64: 128, 128>}, {pipeline_mode = #tpu.pipeline_mode<synchronous>, transform_indices = @transform_6, window_bounds = array<i64: 1, 128>}, {pipeline_mode = #tpu.pipeline_mode<synchronous>, transform_indices = @transform_7, window_bounds = array<i64: 128, 128>}, {pipeline_mode = #tpu.pipeline_mode<synchronous>, transform_indices = @transform_8, window_bounds = array<i64: 1, 128>}, {pipeline_mode = #tpu.pipeline_mode<synchronous>, transform_indices = @transform_9, window_bounds = array<i64: 128, 128>}, {pipeline_mode = #tpu.pipeline_mode<synchronous>, transform_indices = @transform_10, window_bounds = array<i64: 1, 128>}, {pipeline_mode = #tpu.pipeline_mode<synchronous>, transform_indices = @transform_11, window_bounds = array<i64: 128, 128>}, {pipeline_mode = #tpu.pipeline_mode<synchronous>, transform_indices = @transform_12, window_bounds = array<i64: 1, 128>}, {transform_indices = @transform_13, window_bounds = array<i64: 32, 128>}]} {
    %c0 = arith.constant 0 : index
    %c0_0 = arith.constant 0 : index
    %0 = vector.load %arg1[%c0, %c0_0] : memref<32x128xf32, #tpu.memory_space<vmem>>, vector<32x128xf32>
    %c0_1 = arith.constant 0 : index
    %c0_2 = arith.constant 0 : index
    %1 = vector.load %arg2[%c0_1, %c0_2] : memref<128x128xbf16, #tpu.memory_space<vmem>>, vector<128x128xbf16>
    %2 = arith.truncf %0 : vector<32x128xf32> to vector<32x128xbf16>
    %cst = arith.constant dense<0.000000e+00> : vector<32x128xf32>
    %3 = tpu.matmul %2, %1, %cst {dimension_numbers = #tpu.dot_dimension_numbers<[1], [0], [0], [1], [0, 0, 1, 1], [], []>} : vector<32x128xbf16>, vector<128x128xbf16>, vector<32x128xf32> -> vector<32x128xf32>
    %c0_3 = arith.constant 0 : index
    %c0_4 = arith.constant 0 : index
    %4 = vector.load %arg3[%c0_3, %c0_4] : memref<1x128xf32, #tpu.memory_space<vmem>>, vector<1x128xf32>
    %5 = vector.broadcast %4 : vector<1x128xf32> to vector<32x128xf32>
    %6 = arith.addf %3, %5 : vector<32x128xf32>
    %cst_5 = arith.constant 0.000000e+00 : f32
    %7 = vector.broadcast %cst_5 : f32 to vector<32x128xf32>
    %8 = arith.maximumf %6, %7 : vector<32x128xf32>
    %c0_6 = arith.constant 0 : index
    %c0_7 = arith.constant 0 : index
    %9 = vector.load %arg4[%c0_6, %c0_7] : memref<128x128xbf16, #tpu.memory_space<vmem>>, vector<128x128xbf16>
    %10 = arith.truncf %8 : vector<32x128xf32> to vector<32x128xbf16>
    %cst_8 = arith.constant dense<0.000000e+00> : vector<32x128xf32>
    %11 = tpu.matmul %10, %9, %cst_8 {dimension_numbers = #tpu.dot_dimension_numbers<[1], [0], [0], [1], [0, 0, 1, 1], [], []>} : vector<32x128xbf16>, vector<128x128xbf16>, vector<32x128xf32> -> vector<32x128xf32>
    %c0_9 = arith.constant 0 : index
    %c0_10 = arith.constant 0 : index
    %12 = vector.load %arg5[%c0_9, %c0_10] : memref<1x128xf32, #tpu.memory_space<vmem>>, vector<1x128xf32>
    %13 = vector.broadcast %12 : vector<1x128xf32> to vector<32x128xf32>
    %14 = arith.addf %11, %13 : vector<32x128xf32>
    %cst_11 = arith.constant 0.000000e+00 : f32
    %15 = vector.broadcast %cst_11 : f32 to vector<32x128xf32>
    %16 = arith.maximumf %14, %15 : vector<32x128xf32>
    %c0_12 = arith.constant 0 : index
    %c0_13 = arith.constant 0 : index
    %17 = vector.load %arg6[%c0_12, %c0_13] : memref<128x128xbf16, #tpu.memory_space<vmem>>, vector<128x128xbf16>
    %18 = arith.truncf %16 : vector<32x128xf32> to vector<32x128xbf16>
    %cst_14 = arith.constant dense<0.000000e+00> : vector<32x128xf32>
    %19 = tpu.matmul %18, %17, %cst_14 {dimension_numbers = #tpu.dot_dimension_numbers<[1], [0], [0], [1], [0, 0, 1, 1], [], []>} : vector<32x128xbf16>, vector<128x128xbf16>, vector<32x128xf32> -> vector<32x128xf32>
    %c0_15 = arith.constant 0 : index
    %c0_16 = arith.constant 0 : index
    %20 = vector.load %arg7[%c0_15, %c0_16] : memref<1x128xf32, #tpu.memory_space<vmem>>, vector<1x128xf32>
    %21 = vector.broadcast %20 : vector<1x128xf32> to vector<32x128xf32>
    %22 = arith.addf %19, %21 : vector<32x128xf32>
    %cst_17 = arith.constant 0.000000e+00 : f32
    %23 = vector.broadcast %cst_17 : f32 to vector<32x128xf32>
    %24 = arith.maximumf %22, %23 : vector<32x128xf32>
    %c0_18 = arith.constant 0 : index
    %c0_19 = arith.constant 0 : index
    %25 = vector.load %arg8[%c0_18, %c0_19] : memref<128x128xbf16, #tpu.memory_space<vmem>>, vector<128x128xbf16>
    %26 = arith.truncf %24 : vector<32x128xf32> to vector<32x128xbf16>
    %cst_20 = arith.constant dense<0.000000e+00> : vector<32x128xf32>
    %27 = tpu.matmul %26, %25, %cst_20 {dimension_numbers = #tpu.dot_dimension_numbers<[1], [0], [0], [1], [0, 0, 1, 1], [], []>} : vector<32x128xbf16>, vector<128x128xbf16>, vector<32x128xf32> -> vector<32x128xf32>
    %c0_21 = arith.constant 0 : index
    %c0_22 = arith.constant 0 : index
    %28 = vector.load %arg9[%c0_21, %c0_22] : memref<1x128xf32, #tpu.memory_space<vmem>>, vector<1x128xf32>
    %29 = vector.broadcast %28 : vector<1x128xf32> to vector<32x128xf32>
    %30 = arith.addf %27, %29 : vector<32x128xf32>
    %cst_23 = arith.constant 0.000000e+00 : f32
    %31 = vector.broadcast %cst_23 : f32 to vector<32x128xf32>
    %32 = arith.maximumf %30, %31 : vector<32x128xf32>
    %c0_24 = arith.constant 0 : index
    %c0_25 = arith.constant 0 : index
    %33 = vector.load %arg10[%c0_24, %c0_25] : memref<128x128xbf16, #tpu.memory_space<vmem>>, vector<128x128xbf16>
    %34 = arith.truncf %32 : vector<32x128xf32> to vector<32x128xbf16>
    %cst_26 = arith.constant dense<0.000000e+00> : vector<32x128xf32>
    %35 = tpu.matmul %34, %33, %cst_26 {dimension_numbers = #tpu.dot_dimension_numbers<[1], [0], [0], [1], [0, 0, 1, 1], [], []>} : vector<32x128xbf16>, vector<128x128xbf16>, vector<32x128xf32> -> vector<32x128xf32>
    %c0_27 = arith.constant 0 : index
    %c0_28 = arith.constant 0 : index
    %36 = vector.load %arg11[%c0_27, %c0_28] : memref<1x128xf32, #tpu.memory_space<vmem>>, vector<1x128xf32>
    %37 = vector.broadcast %36 : vector<1x128xf32> to vector<32x128xf32>
    %38 = arith.addf %35, %37 : vector<32x128xf32>
    %cst_29 = arith.constant 0.000000e+00 : f32
    %39 = vector.broadcast %cst_29 : f32 to vector<32x128xf32>
    %40 = arith.maximumf %38, %39 : vector<32x128xf32>
    %c0_30 = arith.constant 0 : index
    %c0_31 = arith.constant 0 : index
    %41 = vector.load %arg12[%c0_30, %c0_31] : memref<128x128xbf16, #tpu.memory_space<vmem>>, vector<128x128xbf16>
    %42 = arith.truncf %40 : vector<32x128xf32> to vector<32x128xbf16>
    %cst_32 = arith.constant dense<0.000000e+00> : vector<32x128xf32>
    %43 = tpu.matmul %42, %41, %cst_32 {dimension_numbers = #tpu.dot_dimension_numbers<[1], [0], [0], [1], [0, 0, 1, 1], [], []>} : vector<32x128xbf16>, vector<128x128xbf16>, vector<32x128xf32> -> vector<32x128xf32>
    %c0_33 = arith.constant 0 : index
    %c0_34 = arith.constant 0 : index
    %44 = vector.load %arg13[%c0_33, %c0_34] : memref<1x128xf32, #tpu.memory_space<vmem>>, vector<1x128xf32>
    %45 = vector.broadcast %44 : vector<1x128xf32> to vector<32x128xf32>
    %46 = arith.addf %43, %45 : vector<32x128xf32>
    %cst_35 = arith.constant 0.000000e+00 : f32
    %47 = vector.broadcast %cst_35 : f32 to vector<32x128xf32>
    %48 = arith.maximumf %46, %47 : vector<32x128xf32>
    %c0_36 = arith.constant 0 : index
    %c0_37 = arith.constant 0 : index
    %49 = vector.load %arg14[%c0_36, %c0_37] : memref<32x128xf32, #tpu.memory_space<vmem>>, vector<32x128xf32>
    tpu.vector_store %arg14[%c0_36, %c0_37], %48 {strides = array<i32>} : memref<32x128xf32, #tpu.memory_space<vmem>>, vector<32x128xf32>,
    return
  }
  func.func @transform_0(%arg0: i32) -> (i32, i32) {
    %c0_i32 = arith.constant 0 : i32
    %c0_i32_0 = arith.constant 0 : i32
    return %arg0, %c0_i32 : i32, i32
  }
  func.func @transform_1(%arg0: i32) -> (i32, i32) {
    %c0_i32 = arith.constant 0 : i32
    %c0_i32_0 = arith.constant 0 : i32
    %c0_i32_1 = arith.constant 0 : i32
    return %c0_i32, %c0_i32_0 : i32, i32
  }
  func.func @transform_2(%arg0: i32) -> (i32, i32) {
    %c0_i32 = arith.constant 0 : i32
    %c0_i32_0 = arith.constant 0 : i32
    %c0_i32_1 = arith.constant 0 : i32
    return %c0_i32, %c0_i32_0 : i32, i32
  }
  func.func @transform_3(%arg0: i32) -> (i32, i32) {
    %c0_i32 = arith.constant 0 : i32
    %c0_i32_0 = arith.constant 0 : i32
    %c0_i32_1 = arith.constant 0 : i32
    return %c0_i32, %c0_i32_0 : i32, i32
  }
  func.func @transform_4(%arg0: i32) -> (i32, i32) {
    %c0_i32 = arith.constant 0 : i32
    %c0_i32_0 = arith.constant 0 : i32
    %c0_i32_1 = arith.constant 0 : i32
    return %c0_i32, %c0_i32_0 : i32, i32
  }
  func.func @transform_5(%arg0: i32) -> (i32, i32) {
    %c0_i32 = arith.constant 0 : i32
    %c0_i32_0 = arith.constant 0 : i32
    %c0_i32_1 = arith.constant 0 : i32
    return %c0_i32, %c0_i32_0 : i32, i32
  }
  func.func @transform_6(%arg0: i32) -> (i32, i32) {
    %c0_i32 = arith.constant 0 : i32
    %c0_i32_0 = arith.constant 0 : i32
    %c0_i32_1 = arith.constant 0 : i32
    return %c0_i32, %c0_i32_0 : i32, i32
  }
  func.func @transform_7(%arg0: i32) -> (i32, i32) {
    %c0_i32 = arith.constant 0 : i32
    %c0_i32_0 = arith.constant 0 : i32
    %c0_i32_1 = arith.constant 0 : i32
    return %c0_i32, %c0_i32_0 : i32, i32
  }
  func.func @transform_8(%arg0: i32) -> (i32, i32) {
    %c0_i32 = arith.constant 0 : i32
    %c0_i32_0 = arith.constant 0 : i32
    %c0_i32_1 = arith.constant 0 : i32
    return %c0_i32, %c0_i32_0 : i32, i32
  }
  func.func @transform_9(%arg0: i32) -> (i32, i32) {
    %c0_i32 = arith.constant 0 : i32
    %c0_i32_0 = arith.constant 0 : i32
    %c0_i32_1 = arith.constant 0 : i32
    return %c0_i32, %c0_i32_0 : i32, i32
  }
  func.func @transform_10(%arg0: i32) -> (i32, i32) {
    %c0_i32 = arith.constant 0 : i32
    %c0_i32_0 = arith.constant 0 : i32
    %c0_i32_1 = arith.constant 0 : i32
    return %c0_i32, %c0_i32_0 : i32, i32
  }
  func.func @transform_11(%arg0: i32) -> (i32, i32) {
    %c0_i32 = arith.constant 0 : i32
    %c0_i32_0 = arith.constant 0 : i32
    %c0_i32_1 = arith.constant 0 : i32
    return %c0_i32, %c0_i32_0 : i32, i32
  }
  func.func @transform_12(%arg0: i32) -> (i32, i32) {
    %c0_i32 = arith.constant 0 : i32
    %c0_i32_0 = arith.constant 0 : i32
    %c0_i32_1 = arith.constant 0 : i32
    return %c0_i32, %c0_i32_0 : i32, i32
  }
  func.func @transform_13(%arg0: i32) -> (i32, i32) {
    %c0_i32 = arith.constant 0 : i32
    %c0_i32_0 = arith.constant 0 : i32
    return %arg0, %c0_i32 : i32, i32
  }
}

module attributes {stable_mosaic.version = 11 : i64} {
  func.func @_ae_kernel(%arg0: i32, %arg1: memref<32x128xf32, #tpu.memory_space<vmem>>, %arg2: memref<128x128xbf16, #tpu.memory_space<vmem>>, %arg3: memref<1x128xf32, #tpu.memory_space<vmem>>, %arg4: memref<128x128xbf16, #tpu.memory_space<vmem>>, %arg5: memref<1x128xf32, #tpu.memory_space<vmem>>, %arg6: memref<128x128xbf16, #tpu.memory_space<vmem>>, %arg7: memref<1x128xf32, #tpu.memory_space<vmem>>, %arg8: memref<128x128xbf16, #tpu.memory_space<vmem>>, %arg9: memref<1x128xf32, #tpu.memory_space<vmem>>, %arg10: memref<128x128xbf16, #tpu.memory_space<vmem>>, %arg11: memref<1x128xf32, #tpu.memory_space<vmem>>, %arg12: memref<128x128xbf16, #tpu.memory_space<vmem>>, %arg13: memref<1x128xf32, #tpu.memory_space<vmem>>, %arg14: memref<32x128xf32, #tpu.memory_space<vmem>>) attributes {dimension_semantics = [#tpu.dimension_semantics<parallel>], iteration_bounds = array<i64: 1>, scalar_prefetch = 0 : i64, scratch_operands = 0 : i64, tpu.core_type = #tpu.core_type<tc>, window_params = [{transform_indices = @transform_0, window_bounds = array<i64: 32, 128>}, {pipeline_mode = #tpu.pipeline_mode<synchronous>, transform_indices = @transform_1, window_bounds = array<i64: 128, 128>}, {pipeline_mode = #tpu.pipeline_mode<synchronous>, transform_indices = @transform_2, window_bounds = array<i64: 1, 128>}, {pipeline_mode = #tpu.pipeline_mode<synchronous>, transform_indices = @transform_3, window_bounds = array<i64: 128, 128>}, {pipeline_mode = #tpu.pipeline_mode<synchronous>, transform_indices = @transform_4, window_bounds = array<i64: 1, 128>}, {pipeline_mode = #tpu.pipeline_mode<synchronous>, transform_indices = @transform_5, window_bounds = array<i64: 128, 128>}, {pipeline_mode = #tpu.pipeline_mode<synchronous>, transform_indices = @transform_6, window_bounds = array<i64: 1, 128>}, {pipeline_mode = #tpu.pipeline_mode<synchronous>, transform_indices = @transform_7, window_bounds = array<i64: 128, 128>}, {pipeline_mode = #tpu.pipeline_mode<synchronous>, transform_indices = @transform_8, window_bounds = array<i64: 1, 128>}, {pipeline_mode = #tpu.pipeline_mode<synchronous>, transform_indices = @transform_9, window_bounds = array<i64: 128, 128>}, {pipeline_mode = #tpu.pipeline_mode<synchronous>, transform_indices = @transform_10, window_bounds = array<i64: 1, 128>}, {pipeline_mode = #tpu.pipeline_mode<synchronous>, transform_indices = @transform_11, window_bounds = array<i64: 128, 128>}, {pipeline_mode = #tpu.pipeline_mode<synchronous>, transform_indices = @transform_12, window_bounds = array<i64: 1, 128>}, {transform_indices = @transform_13, window_bounds = array<i64: 32, 128>}]} {
    %c0 = arith.constant 0 : index
    %c0_0 = arith.constant 0 : index
    %0 = vector.load %arg1[%c0, %c0_0] : memref<32x128xf32, #tpu.memory_space<vmem>>, vector<32x128xf32>
    %c0_1 = arith.constant 0 : index
    %c0_2 = arith.constant 0 : index
    %1 = vector.load %arg2[%c0_1, %c0_2] : memref<128x128xbf16, #tpu.memory_space<vmem>>, vector<128x128xbf16>
    %2 = arith.truncf %0 : vector<32x128xf32> to vector<32x128xbf16>
    %cst = arith.constant dense<0.000000e+00> : vector<32x128xf32>
    %3 = tpu.matmul %2, %1, %cst {dimension_numbers = #tpu.dot_dimension_numbers<[1], [0], [0], [1], [0, 0, 1, 1], [], []>} : vector<32x128xbf16>, vector<128x128xbf16>, vector<32x128xf32> -> vector<32x128xf32>
    %c0_3 = arith.constant 0 : index
    %c0_4 = arith.constant 0 : index
    %4 = vector.load %arg3[%c0_3, %c0_4] : memref<1x128xf32, #tpu.memory_space<vmem>>, vector<1x128xf32>
    %5 = vector.broadcast %4 : vector<1x128xf32> to vector<32x128xf32>
    %6 = arith.addf %3, %5 : vector<32x128xf32>
    %cst_5 = arith.constant 0.000000e+00 : f32
    %7 = vector.broadcast %cst_5 : f32 to vector<32x128xf32>
    %8 = arith.maximumf %6, %7 : vector<32x128xf32>
    %c0_6 = arith.constant 0 : index
    %c0_7 = arith.constant 0 : index
    %9 = vector.load %arg4[%c0_6, %c0_7] : memref<128x128xbf16, #tpu.memory_space<vmem>>, vector<128x128xbf16>
    %10 = arith.truncf %8 : vector<32x128xf32> to vector<32x128xbf16>
    %cst_8 = arith.constant dense<0.000000e+00> : vector<32x128xf32>
    %11 = tpu.matmul %10, %9, %cst_8 {dimension_numbers = #tpu.dot_dimension_numbers<[1], [0], [0], [1], [0, 0, 1, 1], [], []>} : vector<32x128xbf16>, vector<128x128xbf16>, vector<32x128xf32> -> vector<32x128xf32>
    %c0_9 = arith.constant 0 : index
    %c0_10 = arith.constant 0 : index
    %12 = vector.load %arg5[%c0_9, %c0_10] : memref<1x128xf32, #tpu.memory_space<vmem>>, vector<1x128xf32>
    %13 = vector.broadcast %12 : vector<1x128xf32> to vector<32x128xf32>
    %14 = arith.addf %11, %13 : vector<32x128xf32>
    %cst_11 = arith.constant 0.000000e+00 : f32
    %15 = vector.broadcast %cst_11 : f32 to vector<32x128xf32>
    %16 = arith.maximumf %14, %15 : vector<32x128xf32>
    %c0_12 = arith.constant 0 : index
    %c0_13 = arith.constant 0 : index
    %17 = vector.load %arg6[%c0_12, %c0_13] : memref<128x128xbf16, #tpu.memory_space<vmem>>, vector<128x128xbf16>
    %18 = arith.truncf %16 : vector<32x128xf32> to vector<32x128xbf16>
    %cst_14 = arith.constant dense<0.000000e+00> : vector<32x128xf32>
    %19 = tpu.matmul %18, %17, %cst_14 {dimension_numbers = #tpu.dot_dimension_numbers<[1], [0], [0], [1], [0, 0, 1, 1], [], []>} : vector<32x128xbf16>, vector<128x128xbf16>, vector<32x128xf32> -> vector<32x128xf32>
    %c0_15 = arith.constant 0 : index
    %c0_16 = arith.constant 0 : index
    %20 = vector.load %arg7[%c0_15, %c0_16] : memref<1x128xf32, #tpu.memory_space<vmem>>, vector<1x128xf32>
    %21 = vector.broadcast %20 : vector<1x128xf32> to vector<32x128xf32>
    %22 = arith.addf %19, %21 : vector<32x128xf32>
    %cst_17 = arith.constant 0.000000e+00 : f32
    %23 = vector.broadcast %cst_17 : f32 to vector<32x128xf32>
    %24 = arith.maximumf %22, %23 : vector<32x128xf32>
    %c0_18 = arith.constant 0 : index
    %c0_19 = arith.constant 0 : index
    %25 = vector.load %arg8[%c0_18, %c0_19] : memref<128x128xbf16, #tpu.memory_space<vmem>>, vector<128x128xbf16>
    %26 = arith.truncf %24 : vector<32x128xf32> to vector<32x128xbf16>
    %cst_20 = arith.constant dense<0.000000e+00> : vector<32x128xf32>
    %27 = tpu.matmul %26, %25, %cst_20 {dimension_numbers = #tpu.dot_dimension_numbers<[1], [0], [0], [1], [0, 0, 1, 1], [], []>} : vector<32x128xbf16>, vector<128x128xbf16>, vector<32x128xf32> -> vector<32x128xf32>
    %c0_21 = arith.constant 0 : index
    %c0_22 = arith.constant 0 : index
    %28 = vector.load %arg9[%c0_21, %c0_22] : memref<1x128xf32, #tpu.memory_space<vmem>>, vector<1x128xf32>
    %29 = vector.broadcast %28 : vector<1x128xf32> to vector<32x128xf32>
    %30 = arith.addf %27, %29 : vector<32x128xf32>
    %cst_23 = arith.constant 0.000000e+00 : f32
    %31 = vector.broadcast %cst_23 : f32 to vector<32x128xf32>
    %32 = arith.maximumf %30, %31 : vector<32x128xf32>
    %c0_24 = arith.constant 0 : index
    %c0_25 = arith.constant 0 : index
    %33 = vector.load %arg10[%c0_24, %c0_25] : memref<128x128xbf16, #tpu.memory_space<vmem>>, vector<128x128xbf16>
    %34 = arith.truncf %32 : vector<32x128xf32> to vector<32x128xbf16>
    %cst_26 = arith.constant dense<0.000000e+00> : vector<32x128xf32>
    %35 = tpu.matmul %34, %33, %cst_26 {dimension_numbers = #tpu.dot_dimension_numbers<[1], [0], [0], [1], [0, 0, 1, 1], [], []>} : vector<32x128xbf16>, vector<128x128xbf16>, vector<32x128xf32> -> vector<32x128xf32>
    %c0_27 = arith.constant 0 : index
    %c0_28 = arith.constant 0 : index
    %36 = vector.load %arg11[%c0_27, %c0_28] : memref<1x128xf32, #tpu.memory_space<vmem>>, vector<1x128xf32>
    %37 = vector.broadcast %36 : vector<1x128xf32> to vector<32x128xf32>
    %38 = arith.addf %35, %37 : vector<32x128xf32>
    %cst_29 = arith.constant 0.000000e+00 : f32
    %39 = vector.broadcast %cst_29 : f32 to vector<32x128xf32>
    %40 = arith.maximumf %38, %39 : vector<32x128xf32>
    %c0_30 = arith.constant 0 : index
    %c0_31 = arith.constant 0 : index
    %41 = vector.load %arg12[%c0_30, %c0_31] : memref<128x128xbf16, #tpu.memory_space<vmem>>, vector<128x128xbf16>
    %42 = arith.truncf %40 : vector<32x128xf32> to vector<32x128xbf16>
    %cst_32 = arith.constant dense<0.000000e+00> : vector<32x128xf32>
    %43 = tpu.matmul %42, %41, %cst_32 {dimension_numbers = #tpu.dot_dimension_numbers<[1], [0], [0], [1], [0, 0, 1, 1], [], []>} : vector<32x128xbf16>, vector<128x128xbf16>, vector<32x128xf32> -> vector<32x128xf32>
    %c0_33 = arith.constant 0 : index
    %c0_34 = arith.constant 0 : index
    %44 = vector.load %arg13[%c0_33, %c0_34] : memref<1x128xf32, #tpu.memory_space<vmem>>, vector<1x128xf32>
    %45 = vector.broadcast %44 : vector<1x128xf32> to vector<32x128xf32>
    %46 = arith.addf %43, %45 : vector<32x128xf32>
    %cst_35 = arith.constant 0.000000e+00 : f32
    %47 = vector.broadcast %cst_35 : f32 to vector<32x128xf32>
    %48 = arith.maximumf %46, %47 : vector<32x128xf32>
    %c0_36 = arith.constant 0 : index
    %c0_37 = arith.constant 0 : index
    %49 = vector.load %arg14[%c0_36, %c0_37] : memref<32x128xf32, #tpu.memory_space<vmem>>, vector<32x128xf32>
    tpu.vector_store %arg14[%c0_36, %c0_37], %48 {strides = array<i32>} : memref<32x128xf32, #tpu.memory_space<vmem>>, vector<32x128xf32>,
    return
  }
  func.func @transform_0(%arg0: i32) -> (i32, i32) {
    %c0_i32 = arith.constant 0 : i32
    %c0_i32_0 = arith.constant 0 : i32
    return %arg0, %c0_i32 : i32, i32
  }
  func.func @transform_1(%arg0: i32) -> (i32, i32) {
    %c0_i32 = arith.constant 0 : i32
    %c0_i32_0 = arith.constant 0 : i32
    %c0_i32_1 = arith.constant 0 : i32
    return %c0_i32, %c0_i32_0 : i32, i32
  }
  func.func @transform_2(%arg0: i32) -> (i32, i32) {
    %c0_i32 = arith.constant 0 : i32
    %c0_i32_0 = arith.constant 0 : i32
    %c0_i32_1 = arith.constant 0 : i32
    return %c0_i32, %c0_i32_0 : i32, i32
  }
  func.func @transform_3(%arg0: i32) -> (i32, i32) {
    %c0_i32 = arith.constant 0 : i32
    %c0_i32_0 = arith.constant 0 : i32
    %c0_i32_1 = arith.constant 0 : i32
    return %c0_i32, %c0_i32_0 : i32, i32
  }
  func.func @transform_4(%arg0: i32) -> (i32, i32) {
    %c0_i32 = arith.constant 0 : i32
    %c0_i32_0 = arith.constant 0 : i32
    %c0_i32_1 = arith.constant 0 : i32
    return %c0_i32, %c0_i32_0 : i32, i32
  }
  func.func @transform_5(%arg0: i32) -> (i32, i32) {
    %c0_i32 = arith.constant 0 : i32
    %c0_i32_0 = arith.constant 0 : i32
    %c0_i32_1 = arith.constant 0 : i32
    return %c0_i32, %c0_i32_0 : i32, i32
  }
  func.func @transform_6(%arg0: i32) -> (i32, i32) {
    %c0_i32 = arith.constant 0 : i32
    %c0_i32_0 = arith.constant 0 : i32
    %c0_i32_1 = arith.constant 0 : i32
    return %c0_i32, %c0_i32_0 : i32, i32
  }
  func.func @transform_7(%arg0: i32) -> (i32, i32) {
    %c0_i32 = arith.constant 0 : i32
    %c0_i32_0 = arith.constant 0 : i32
    %c0_i32_1 = arith.constant 0 : i32
    return %c0_i32, %c0_i32_0 : i32, i32
  }
  func.func @transform_8(%arg0: i32) -> (i32, i32) {
    %c0_i32 = arith.constant 0 : i32
    %c0_i32_0 = arith.constant 0 : i32
    %c0_i32_1 = arith.constant 0 : i32
    return %c0_i32, %c0_i32_0 : i32, i32
  }
  func.func @transform_9(%arg0: i32) -> (i32, i32) {
    %c0_i32 = arith.constant 0 : i32
    %c0_i32_0 = arith.constant 0 : i32
    %c0_i32_1 = arith.constant 0 : i32
    return %c0_i32, %c0_i32_0 : i32, i32
  }
  func.func @transform_10(%arg0: i32) -> (i32, i32) {
    %c0_i32 = arith.constant 0 : i32
    %c0_i32_0 = arith.constant 0 : i32
    %c0_i32_1 = arith.constant 0 : i32
    return %c0_i32, %c0_i32_0 : i32, i32
  }
  func.func @transform_11(%arg0: i32) -> (i32, i32) {
    %c0_i32 = arith.constant 0 : i32
    %c0_i32_0 = arith.constant 0 : i32
    %c0_i32_1 = arith.constant 0 : i32
    return %c0_i32, %c0_i32_0 : i32, i32
  }
  func.func @transform_12(%arg0: i32) -> (i32, i32) {
    %c0_i32 = arith.constant 0 : i32
    %c0_i32_0 = arith.constant 0 : i32
    %c0_i32_1 = arith.constant 0 : i32
    return %c0_i32, %c0_i32_0 : i32, i32
  }
  func.func @transform_13(%arg0: i32) -> (i32, i32) {
    %c0_i32 = arith.constant 0 : i32
    %c0_i32_0 = arith.constant 0 : i32
    return %arg0, %c0_i32 : i32, i32
  }
}

</mosaic_0001>

<bundles_post_ra>
// kernel: autoencoder_forward.1
= control target key start
LH: loop header
LB: loop body
LE: loop exit
PB: predicated region body
PF: predicated region fallthrough
CT: control target
= control target key end

     0   :  { %18 = vsyncpa [#allocation3], 0  ;;  %s922_s28 = smov [#allocation2]   ;;  %s923_s30 = smov 64   ;;  %s1160_s0 = inlined_call_operand.vmem [shape: f32[32,128], index: 0, kind: input, shape index: {}]   ;;  %s1161_s1 = inlined_call_operand.vmem [shape: bf16[128,128], index: 1, kind: input, shape index: {}]   ;;  %s1162_s2 = inlined_call_operand.vmem [shape: f32[1,128], index: 2, kind: input, shape index: {}]   ;;  %s1163_s3 = inlined_call_operand.vmem [shape: bf16[128,128], index: 3, kind: input, shape index: {}]   ;;  %s1164_s4 = inlined_call_operand.vmem [shape: f32[1,128], index: 4, kind: input, shape index: {}]   ;;  %s1165_s5 = inlined_call_operand.vmem [shape: bf16[128,128], index: 5, kind: input, shape index: {}]   ;;  %s1166_s6 = inlined_call_operand.vmem [shape: f32[1,128], index: 6, kind: input, shape index: {}]   ;;  %s1167_s7 = inlined_call_operand.vmem [shape: bf16[128,128], index: 7, kind: input, shape index: {}]   ;;  %s1168_s8 = inlined_call_operand.vmem [shape: f32[1,128], index: 8, kind: input, shape index: {}]   ;;  %s1169_s9 = inlined_call_operand.vmem [shape: bf16[128,128], index: 9, kind: input, shape index: {}]   ;;  %s1170_s10 = inlined_call_operand.vmem [shape: f32[1,128], index: 10, kind: input, shape index: {}]   ;;  %s1171_s11 = inlined_call_operand.hbm [shape: bf16[128,128], index: 11, kind: input, shape index: {}]   ;;  %s1172_s12 = inlined_call_operand.vmem [shape: f32[1,128], index: 12, kind: input, shape index: {}]   ;;  %s1173_s13 = inlined_call_operand.vmem [shape: f32[32,128], index: 13, kind: output, shape index: {}]  }
   0x1   :  { %s45_s27 = sshll.u32 %s1171_s11, 4  ;;  %s47_s29 = sshll.u32 %s922_s28, 4  ;;  %s46_s27 = int_to_ptr.hbm [resolvable:$true] %s45_s27  ;;  %s48_s29 = int_to_ptr.vmem [resolvable:$true] %s47_s29 }
   0x2   :  { %s924_s14 = smov 4  }
   0x3   :  { %53 = dma.hbm_to_vmem [thread:$0]  %s46_s27, 1024, %s48_s29, [#allocation3], %s923_s30, %s923_s30, %s924_s14  }
   0x4   :  { %920 = dma.done.wait [#allocation3], 1024  }
   0x5   :  { %921 = vsyncadd [#allocation3], 4294966272  ;;  %v830_v0 = vld [vmem:[%s1161_s1 + $0x38] sm:$0xff]  ;;  %v829_v1 = vld [vmem:[%s1161_s1 + $0x30] sm:$0xff] }
   0x6   :  { %134 = vmatpush.bf16.msra.mxu0 %v830_v0  ;;  %v828_v2 = vld [vmem:[%s1161_s1 + $0x28] sm:$0xff]  ;;  %v827_v3 = vld [vmem:[%s1161_s1 + $0x20] sm:$0xff]  ;;  %v826_v4 = vld [vmem:[%s1161_s1 + $0x18] sm:$0xff] }
   0x7   :  { %v838_v5 = vld [vmem:[%s1163_s3 + $0x38] sm:$0xff]  ;;  %v825_v6 = vld [vmem:[%s1161_s1 + $0x10] sm:$0xff]  ;;  %v824_v8 = vld [vmem:[%s1161_s1 + $0x8] sm:$0xff] }
   0x8   :  { %227 = vmatpush.bf16.msra.mxu1 %v838_v5  ;;  %v837_v7 = vld [vmem:[%s1163_s3 + $0x30] sm:$0xff]  ;;  %v836_v9 = vld [vmem:[%s1163_s3 + $0x28] sm:$0xff]  ;;  %v823_v10 = vld [vmem:[%s1161_s1] sm:$0xff] }
   0x9   :  { %v60_v11 = vld [vmem:[%s1160_s0] sm:$0xff]  ;;  %v61_v12 = vld [vmem:[%s1160_s0 + $0x8] sm:$0xff]  ;;  %v62_v15 = vld [vmem:[%s1160_s0 + $0x10] sm:$0xff] }
   0xa   :  { %135 = vmatpush.bf16.msra.mxu0 %v829_v1  ;;  %v835_v13 = vld [vmem:[%s1163_s3 + $0x20] sm:$0xff]  ;;  %v80_v14 = vpack.c.bf16 %v61_v12, %v60_v11  ;;  %v63_v16 = vld [vmem:[%s1160_s0 + $0x18] sm:$0xff]  ;;  %v833_v19 = vld [vmem:[%s1163_s3 + $0x10] sm:$0xff] }
   0xb   :  { %v81_v17 = vpack.c.bf16 %v63_v16, %v62_v15  ;;  %v834_v18 = vld [vmem:[%s1163_s3 + $0x18] sm:$0xff]  ;;  %v832_v20 = vld [vmem:[%s1163_s3 + $0x8] sm:$0xff]  ;;  %v831_v21 = vld [vmem:[%s1163_s3] sm:$0xff] }
   0xc   :  { %228 = vmatpush.bf16.msra.mxu1 %v837_v7  ;;  %v846_v22 = vld [vmem:[%s1165_s5 + $0x38] sm:$0xff]  ;;  %v845_v24 = vld [vmem:[%s1165_s5 + $0x30] sm:$0xff]  ;;  %v890_v25 = vld [vmem:[%s1162_s2] ss:$0 sm:$0xff] }
   0xd   :  { %320 = vmatpush.bf16.msra.mxu2 %v846_v22  ;;  %v844_v26 = vld [vmem:[%s1165_s5 + $0x28] sm:$0xff]  ;;  %v843_v30 = vld [vmem:[%s1165_s5 + $0x20] sm:$0xff]  ;;  %v842_v41 = vld [vmem:[%s1165_s5 + $0x18] sm:$0xff] }
   0xe   :  { %136 = vmatpush.bf16.msra.mxu0 %v828_v2  ;;  %v841_v42 = vld [vmem:[%s1165_s5 + $0x10] sm:$0xff]  ;;  %v840_v43 = vld [vmem:[%s1165_s5 + $0x8] sm:$0xff]  ;;  %v839_v44 = vld [vmem:[%s1165_s5] sm:$0xff] }
   0xf   :  { %v854_v45 = vld [vmem:[%s1167_s7 + $0x38] sm:$0xff]  ;;  %v853_v47 = vld [vmem:[%s1167_s7 + $0x30] sm:$0xff]  ;;  %v891_v48 = vld [vmem:[%s1164_s4] ss:$0 sm:$0xff] }
  0x10   :  { %229 = vmatpush.bf16.msra.mxu1 %v836_v9  ;;  %413 = vmatpush.bf16.msra.mxu3 %v854_v45  ;;  %v852_v49 = vld [vmem:[%s1167_s7 + $0x28] sm:$0xff]  ;;  %v851_v53 = vld [vmem:[%s1167_s7 + $0x20] sm:$0xff]  ;;  %v850_v0 = vld [vmem:[%s1167_s7 + $0x18] sm:$0xff] }
  0x11   :  { %321 = vmatpush.bf16.msra.mxu2 %v845_v24  ;;  %v849_v1 = vld [vmem:[%s1167_s7 + $0x10] sm:$0xff]  ;;  %v848_v2 = vld [vmem:[%s1167_s7 + $0x8] sm:$0xff]  ;;  %v892_v7 = vld [vmem:[%s1166_s6] ss:$0 sm:$0xff] }
  0x12   :  { %137 = vmatpush.bf16.msra.mxu0 %v827_v3  ;;  %v847_v3 = vld [vmem:[%s1167_s7] sm:$0xff]  ;;  %v857_v24 = vld [vmem:[%s1169_s9 + $0x10] sm:$0xff] }
  0x13   :  { %v859_v12 = vld [vmem:[%s1169_s9 + $0x20] sm:$0xff] }
  0x14   :  { %230 = vmatpush.bf16.msra.mxu1 %v835_v13  ;;  %414 = vmatpush.bf16.msra.mxu3 %v853_v47  ;;  %v865_v47 = vld [vmem:[#allocation2 + $0x10] sm:$0xff] }
  0x15   :  { %322 = vmatpush.bf16.msra.mxu2 %v844_v26  ;;  %v855_v26 = vld [vmem:[%s1169_s9] sm:$0xff] }
  0x16   :  { %138 = vmatpush.bf16.msra.mxu0 %v826_v4  ;;  %v862_v4 = vld [vmem:[%s1169_s9 + $0x38] sm:$0xff] }
  0x18   :  { %231 = vmatpush.bf16.msra.mxu1 %v834_v18  ;;  %415 = vmatpush.bf16.msra.mxu3 %v852_v49  ;;  %v863_v49 = vld [vmem:[#allocation2] sm:$0xff] }
  0x19   :  { %323 = vmatpush.bf16.msra.mxu2 %v843_v30  ;;  %v893_v30 = vld [vmem:[%s1168_s8] ss:$0 sm:$0xff] }
  0x1a   :  { %139 = vmatpush.bf16.msra.mxu0 %v825_v6  ;;  %v861_v6 = vld [vmem:[%s1169_s9 + $0x30] sm:$0xff] }
  0x1c   :  { %232 = vmatpush.bf16.msra.mxu1 %v833_v19  ;;  %416 = vmatpush.bf16.msra.mxu3 %v851_v53 }
  0x1d   :  { %324 = vmatpush.bf16.msra.mxu2 %v842_v41 }
  0x1e   :  { %140 = vmatpush.bf16.msra.mxu0 %v824_v8  ;;  %v860_v8 = vld [vmem:[%s1169_s9 + $0x28] sm:$0xff] }
  0x20   :  { %233 = vmatpush.bf16.msra.mxu1 %v832_v20  ;;  %417 = vmatpush.bf16.msra.mxu3 %v850_v0 }
  0x21   :  { %325 = vmatpush.bf16.msra.mxu2 %v841_v42 }
  0x22   :  { %141 = vmatpush.bf16.msra.mxu0 %v823_v10 }
  0x24   :  { %234 = vmatpush.bf16.msra.mxu1 %v831_v21  ;;  %418 = vmatpush.bf16.msra.mxu3 %v849_v1  ;;  %v895_v1 = vld [vmem:[%s1172_s12] ss:$0 sm:$0xff] }
  0x25   :  { %142 = vmatmul.bf16.vlgmr.msra.gmra.mxu0 %v80_v14  ;;  %326 = vmatpush.bf16.msra.mxu2 %v840_v43 }
  0x26   :  { %506 = vmatpush.bf16.msrb.mxu0 %v862_v4 }
  0x28   :  { %419 = vmatpush.bf16.msra.mxu3 %v848_v2 }
  0x29   :  { %327 = vmatpush.bf16.msra.mxu2 %v839_v44 }
  0x2a   :  { %507 = vmatpush.bf16.msrb.mxu0 %v861_v6 }
  0x2c   :  { %420 = vmatpush.bf16.msra.mxu3 %v847_v3 }
  0x2d   :  { %871 = vmatpush.bf16.msrb.mxu2 %v862_v4 }
  0x2e   :  { %508 = vmatpush.bf16.msrb.mxu0 %v860_v8 }
  0x31   :  { %872 = vmatpush.bf16.msrb.mxu2 %v861_v6 }
  0x32   :  { %509 = vmatpush.bf16.msrb.mxu0 %v859_v12 }
  0x35   :  { %147 = vmatmul.bf16.gmra.mxu0 %v81_v17  ;;  %873 = vmatpush.bf16.msrb.mxu2 %v860_v8 }
  0x39   :  { %874 = vmatpush.bf16.msrb.mxu2 %v859_v12 }
  0xa2   :  { %v143_v23 = vpop.f32.mrf.mxu0 }
  0xa3   :  { %v144_v27 = vadd.f32 %v890_v25, %v143_v23  ;;  %v858_v23 = vld [vmem:[%s1169_s9 + $0x18] sm:$0xff] }
  0xa4   :  { %510 = vmatpush.bf16.msrb.mxu0 %v858_v23  ;;  %875 = vmatpush.bf16.msrb.mxu2 %v858_v23 }
  0xa5   :  { %v153_v31 = vmax.f32 %v144_v27, 0.0  ;;  %v870_v27 = vld [vmem:[#allocation2 + $0x38] sm:$0xff] }
  0xa6   :  { %599 = vmatpush.bf16.msrb.mxu1 %v870_v27  ;;  %879 = vmatpush.bf16.msrb.mxu3 %v870_v27 }
  0xa8   :  { %511 = vmatpush.bf16.msrb.mxu0 %v857_v24  ;;  %876 = vmatpush.bf16.msrb.mxu2 %v857_v24 }
  0xaa   :  { %v145_v28 = vpop.f32.mrf.mxu0 }
  0xab   :  { %v146_v29 = vadd.f32 %v890_v25, %v145_v28 }
  0xad   :  { %v154_v32 = vmax.f32 %v146_v29, 0.0  ;;  %v869_v29 = vld [vmem:[#allocation2 + $0x30] sm:$0xff] }
  0xae   :  { %600 = vmatpush.bf16.msrb.mxu1 %v869_v29  ;;  %880 = vmatpush.bf16.msrb.mxu3 %v869_v29 }
  0xaf   :  { %v173_v33 = vpack.c.bf16 %v154_v32, %v153_v31  ;;  %v868_v31 = vld [vmem:[#allocation2 + $0x28] sm:$0xff] }
  0xb1   :  { %235 = vmatmul.bf16.vlgmr.msra.gmra.mxu1 %v173_v33 }
  0xb2   :  { %v148_v34 = vpop.f32.mrf.mxu0  ;;  %601 = vmatpush.bf16.msrb.mxu1 %v868_v31  ;;  %881 = vmatpush.bf16.msrb.mxu3 %v868_v31 }
  0xb3   :  { %v149_v35 = vadd.f32 %v890_v25, %v148_v34 }
  0xb5   :  { %v155_v38 = vmax.f32 %v149_v35, 0.0  ;;  %v867_v35 = vld [vmem:[#allocation2 + $0x20] sm:$0xff] }
  0xb6   :  { %602 = vmatpush.bf16.msrb.mxu1 %v867_v35  ;;  %882 = vmatpush.bf16.msrb.mxu3 %v867_v35 }
  0xba   :  { %v150_v36 = vpop.f32.mrf.mxu0 }
  0xbb   :  { %v151_v37 = vadd.f32 %v890_v25, %v150_v36  ;;  %v856_v25 = vld [vmem:[%s1169_s9 + $0x8] sm:$0xff] }
  0xbc   :  { %512 = vmatpush.bf16.msrb.mxu0 %v856_v25  ;;  %877 = vmatpush.bf16.msrb.mxu2 %v856_v25 }
  0xbd   :  { %v156_v39 = vmax.f32 %v151_v37, 0.0 }
  0xbf   :  { %v174_v40 = vpack.c.bf16 %v156_v39, %v155_v38 }
  0xc0   :  { %513 = vmatpush.bf16.msrb.mxu0 %v855_v26  ;;  %878 = vmatpush.bf16.msrb.mxu2 %v855_v26 }
  0xc1   :  { %240 = vmatmul.bf16.gmra.mxu1 %v174_v40 }
 0x12e   :  { %v236_v46 = vpop.f32.mrf.mxu1 }
 0x12f   :  { %v237_v50 = vadd.f32 %v891_v48, %v236_v46  ;;  %v866_v46 = vld [vmem:[#allocation2 + $0x18] sm:$0xff] }
 0x130   :  { %603 = vmatpush.bf16.msrb.mxu1 %v866_v46  ;;  %883 = vmatpush.bf16.msrb.mxu3 %v866_v46 }
 0x131   :  { %v246_v54 = vmax.f32 %v237_v50, 0.0 }
 0x134   :  { %604 = vmatpush.bf16.msrb.mxu1 %v865_v47  ;;  %884 = vmatpush.bf16.msrb.mxu3 %v865_v47 }
 0x136   :  { %v238_v51 = vpop.f32.mrf.mxu1 }
 0x137   :  { %v239_v52 = vadd.f32 %v891_v48, %v238_v51  ;;  %v894_v51 = vld [vmem:[%s1170_s10] ss:$0 sm:$0xff] }
 0x139   :  { %v247_v55 = vmax.f32 %v239_v52, 0.0 }
 0x13b   :  { %v266_v56 = vpack.c.bf16 %v247_v55, %v246_v54 }
 0x13d   :  { %328 = vmatmul.bf16.vlgmr.msra.gmra.mxu2 %v266_v56 }
 0x13e   :  { %v241_v57 = vpop.f32.mrf.mxu1 }
 0x13f   :  { %v242_v58 = vadd.f32 %v891_v48, %v241_v57 }
 0x141   :  { %v248_v61 = vmax.f32 %v242_v58, 0.0 }
 0x146   :  { %v243_v59 = vpop.f32.mrf.mxu1 }
 0x147   :  { %v244_v60 = vadd.f32 %v891_v48, %v243_v59  ;;  %v864_v48 = vld [vmem:[#allocation2 + $0x8] sm:$0xff] }
 0x148   :  { %605 = vmatpush.bf16.msrb.mxu1 %v864_v48  ;;  %885 = vmatpush.bf16.msrb.mxu3 %v864_v48 }
 0x149   :  { %v249_v62 = vmax.f32 %v244_v60, 0.0 }
 0x14b   :  { %v267_v63 = vpack.c.bf16 %v249_v62, %v248_v61 }
 0x14c   :  { %606 = vmatpush.bf16.msrb.mxu1 %v863_v49  ;;  %886 = vmatpush.bf16.msrb.mxu3 %v863_v49 }
 0x14d   :  { %333 = vmatmul.bf16.gmra.mxu2 %v267_v63 }
 0x1c0   :  { %v329_v5 = vpop.f32.mrf.mxu2 }
 0x1c1   :  { %v330_v9 = vadd.f32 %v892_v7, %v329_v5 }
 0x1c3   :  { %v339_v13 = vmax.f32 %v330_v9, 0.0 }
 0x1c8   :  { %v331_v10 = vpop.f32.mrf.mxu2 }
 0x1c9   :  { %v332_v11 = vadd.f32 %v892_v7, %v331_v10 }
 0x1cb   :  { %v340_v14 = vmax.f32 %v332_v11, 0.0 }
 0x1cd   :  { %v359_v15 = vpack.c.bf16 %v340_v14, %v339_v13 }
 0x1cf   :  { %421 = vmatmul.bf16.vlgmr.msra.gmra.mxu3 %v359_v15 }
 0x1d0   :  { %v334_v16 = vpop.f32.mrf.mxu2 }
 0x1d1   :  { %v335_v17 = vadd.f32 %v892_v7, %v334_v16 }
 0x1d3   :  { %v341_v20 = vmax.f32 %v335_v17, 0.0 }
 0x1d8   :  { %v336_v18 = vpop.f32.mrf.mxu2 }
 0x1d9   :  { %v337_v19 = vadd.f32 %v892_v7, %v336_v18 }
 0x1db   :  { %v342_v21 = vmax.f32 %v337_v19, 0.0 }
 0x1dd   :  { %v360_v22 = vpack.c.bf16 %v342_v21, %v341_v20 }
 0x1df   :  { %426 = vmatmul.bf16.gmra.mxu3 %v360_v22 }
 0x252   :  { %v422_v28 = vpop.f32.mrf.mxu3 }
 0x253   :  { %v423_v32 = vadd.f32 %v893_v30, %v422_v28 }
 0x255   :  { %v432_v36 = vmax.f32 %v423_v32, 0.0 }
 0x25a   :  { %v424_v33 = vpop.f32.mrf.mxu3 }
 0x25b   :  { %v425_v34 = vadd.f32 %v893_v30, %v424_v33 }
 0x25d   :  { %v433_v37 = vmax.f32 %v425_v34, 0.0 }
 0x25f   :  { %v452_v38 = vpack.c.bf16 %v433_v37, %v432_v36 }
 0x261   :  { %514 = vmatmul.bf16.vlgmr.msrb.gmra.mxu0 %v452_v38 }
 0x262   :  { %v427_v39 = vpop.f32.mrf.mxu3 }
 0x263   :  { %v428_v40 = vadd.f32 %v893_v30, %v427_v39 }
 0x265   :  { %v434_v43 = vmax.f32 %v428_v40, 0.0 }
 0x26a   :  { %v429_v41 = vpop.f32.mrf.mxu3 }
 0x26b   :  { %v430_v42 = vadd.f32 %v893_v30, %v429_v41 }
 0x26d   :  { %v435_v44 = vmax.f32 %v430_v42, 0.0 }
 0x26f   :  { %v453_v45 = vpack.c.bf16 %v435_v44, %v434_v43 }
 0x271   :  { %519 = vmatmul.bf16.vlgmr.msrb.gmra.mxu2 %v453_v45 }
 0x2de   :  { %v515_v50 = vpop.f32.mrf.mxu0 }
 0x2df   :  { %v516_v52 = vadd.f32 %v894_v51, %v515_v50 }
 0x2e1   :  { %v525_v55 = vmax.f32 %v516_v52, 0.0 }
 0x2e6   :  { %v517_v53 = vpop.f32.mrf.mxu0 }
 0x2e7   :  { %v518_v54 = vadd.f32 %v894_v51, %v517_v53 }
 0x2e9   :  { %v526_v56 = vmax.f32 %v518_v54, 0.0 }
 0x2eb   :  { %v545_v57 = vpack.c.bf16 %v526_v56, %v525_v55 }
 0x2ed   :  { %607 = vmatmul.bf16.vlgmr.msrb.gmra.mxu1 %v545_v57 }
 0x2f4   :  { %v520_v58 = vpop.f32.mrf.mxu2 }
 0x2f5   :  { %v521_v59 = vadd.f32 %v894_v51, %v520_v58 }
 0x2f7   :  { %v527_v62 = vmax.f32 %v521_v59, 0.0 }
 0x2fc   :  { %v522_v60 = vpop.f32.mrf.mxu2 }
 0x2fd   :  { %v523_v61 = vadd.f32 %v894_v51, %v522_v60 }
 0x2ff   :  { %v528_v63 = vmax.f32 %v523_v61, 0.0 }
 0x301   :  { %v546_v0 = vpack.c.bf16 %v528_v63, %v527_v62 }
 0x303   :  { %612 = vmatmul.bf16.vlgmr.msrb.gmra.mxu3 %v546_v0 }
 0x36a   :  { %v608_v2 = vpop.f32.mrf.mxu1 }
 0x36b   :  { %v609_v3 = vadd.f32 %v895_v1, %v608_v2 }
 0x36d   :  { %v618_v4 = vmax.f32 %v609_v3, 0.0 }
 0x36f   :  { %622 = vst [vmem:[%s1173_s13] sm:$0xff] %v618_v4 }
 0x372   :  { %v610_v5 = vpop.f32.mrf.mxu1 }
 0x373   :  { %v611_v6 = vadd.f32 %v895_v1, %v610_v5 }
 0x375   :  { %v619_v7 = vmax.f32 %v611_v6, 0.0 }
 0x377   :  { %623 = vst [vmem:[%s1173_s13 + $0x8] sm:$0xff] %v619_v7 }
 0x386   :  { %v613_v8 = vpop.f32.mrf.mxu3 }
 0x387   :  { %v614_v9 = vadd.f32 %v895_v1, %v613_v8 }
 0x389   :  { %v620_v10 = vmax.f32 %v614_v9, 0.0 }
 0x38b   :  { %624 = vst [vmem:[%s1173_s13 + $0x10] sm:$0xff] %v620_v10 }
 0x38e   :  { %v615_v11 = vpop.f32.mrf.mxu3 }
 0x38f   :  { %v616_v12 = vadd.f32 %v895_v1, %v615_v11 }
 0x391   :  { %v621_v13 = vmax.f32 %v616_v12, 0.0 }
 0x393   :  { %625 = vst [vmem:[%s1173_s13 + $0x18] sm:$0xff] %v621_v13 }
 0x394   :  { %630 = vsyncpa [#allocation3], 1 }

// kernel: autoencoder_forward.1
= control target key start
LH: loop header
LB: loop body
LE: loop exit
PB: predicated region body
PF: predicated region fallthrough
CT: control target
= control target key end

     0   :  { %18 = vsyncpa [#allocation3], 0  ;;  %s922_s28 = smov [#allocation2]   ;;  %s923_s30 = smov 64   ;;  %s1160_s0 = inlined_call_operand.vmem [shape: f32[32,128], index: 0, kind: input, shape index: {}]   ;;  %s1161_s1 = inlined_call_operand.vmem [shape: bf16[128,128], index: 1, kind: input, shape index: {}]   ;;  %s1162_s2 = inlined_call_operand.vmem [shape: f32[1,128], index: 2, kind: input, shape index: {}]   ;;  %s1163_s3 = inlined_call_operand.vmem [shape: bf16[128,128], index: 3, kind: input, shape index: {}]   ;;  %s1164_s4 = inlined_call_operand.vmem [shape: f32[1,128], index: 4, kind: input, shape index: {}]   ;;  %s1165_s5 = inlined_call_operand.vmem [shape: bf16[128,128], index: 5, kind: input, shape index: {}]   ;;  %s1166_s6 = inlined_call_operand.vmem [shape: f32[1,128], index: 6, kind: input, shape index: {}]   ;;  %s1167_s7 = inlined_call_operand.vmem [shape: bf16[128,128], index: 7, kind: input, shape index: {}]   ;;  %s1168_s8 = inlined_call_operand.vmem [shape: f32[1,128], index: 8, kind: input, shape index: {}]   ;;  %s1169_s9 = inlined_call_operand.vmem [shape: bf16[128,128], index: 9, kind: input, shape index: {}]   ;;  %s1170_s10 = inlined_call_operand.vmem [shape: f32[1,128], index: 10, kind: input, shape index: {}]   ;;  %s1171_s11 = inlined_call_operand.hbm [shape: bf16[128,128], index: 11, kind: input, shape index: {}]   ;;  %s1172_s12 = inlined_call_operand.vmem [shape: f32[1,128], index: 12, kind: input, shape index: {}]   ;;  %s1173_s13 = inlined_call_operand.vmem [shape: f32[32,128], index: 13, kind: output, shape index: {}]  }
   0x1   :  { %s45_s27 = sshll.u32 %s1171_s11, 4  ;;  %s47_s29 = sshll.u32 %s922_s28, 4  ;;  %s46_s27 = int_to_ptr.hbm [resolvable:$true] %s45_s27  ;;  %s48_s29 = int_to_ptr.vmem [resolvable:$true] %s47_s29 }
   0x2   :  { %s924_s14 = smov 4  }
   0x3   :  { %53 = dma.hbm_to_vmem [thread:$0]  %s46_s27, 1024, %s48_s29, [#allocation3], %s923_s30, %s923_s30, %s924_s14  }
   0x4   :  { %920 = dma.done.wait [#allocation3], 1024  }
   0x5   :  { %921 = vsyncadd [#allocation3], 4294966272  ;;  %v830_v0 = vld [vmem:[%s1161_s1 + $0x38] sm:$0xff]  ;;  %v829_v1 = vld [vmem:[%s1161_s1 + $0x30] sm:$0xff] }
   0x6   :  { %134 = vmatpush.bf16.msra.mxu0 %v830_v0  ;;  %v828_v2 = vld [vmem:[%s1161_s1 + $0x28] sm:$0xff]  ;;  %v827_v3 = vld [vmem:[%s1161_s1 + $0x20] sm:$0xff]  ;;  %v826_v4 = vld [vmem:[%s1161_s1 + $0x18] sm:$0xff] }
   0x7   :  { %v838_v5 = vld [vmem:[%s1163_s3 + $0x38] sm:$0xff]  ;;  %v825_v6 = vld [vmem:[%s1161_s1 + $0x10] sm:$0xff]  ;;  %v824_v8 = vld [vmem:[%s1161_s1 + $0x8] sm:$0xff] }
   0x8   :  { %227 = vmatpush.bf16.msra.mxu1 %v838_v5  ;;  %v837_v7 = vld [vmem:[%s1163_s3 + $0x30] sm:$0xff]  ;;  %v836_v9 = vld [vmem:[%s1163_s3 + $0x28] sm:$0xff]  ;;  %v823_v10 = vld [vmem:[%s1161_s1] sm:$0xff] }
   0x9   :  { %v60_v11 = vld [vmem:[%s1160_s0] sm:$0xff]  ;;  %v61_v12 = vld [vmem:[%s1160_s0 + $0x8] sm:$0xff]  ;;  %v62_v15 = vld [vmem:[%s1160_s0 + $0x10] sm:$0xff] }
   0xa   :  { %135 = vmatpush.bf16.msra.mxu0 %v829_v1  ;;  %v835_v13 = vld [vmem:[%s1163_s3 + $0x20] sm:$0xff]  ;;  %v80_v14 = vpack.c.bf16 %v61_v12, %v60_v11  ;;  %v63_v16 = vld [vmem:[%s1160_s0 + $0x18] sm:$0xff]  ;;  %v833_v19 = vld [vmem:[%s1163_s3 + $0x10] sm:$0xff] }
   0xb   :  { %v81_v17 = vpack.c.bf16 %v63_v16, %v62_v15  ;;  %v834_v18 = vld [vmem:[%s1163_s3 + $0x18] sm:$0xff]  ;;  %v832_v20 = vld [vmem:[%s1163_s3 + $0x8] sm:$0xff]  ;;  %v831_v21 = vld [vmem:[%s1163_s3] sm:$0xff] }
   0xc   :  { %228 = vmatpush.bf16.msra.mxu1 %v837_v7  ;;  %v846_v22 = vld [vmem:[%s1165_s5 + $0x38] sm:$0xff]  ;;  %v845_v24 = vld [vmem:[%s1165_s5 + $0x30] sm:$0xff]  ;;  %v890_v25 = vld [vmem:[%s1162_s2] ss:$0 sm:$0xff] }
   0xd   :  { %320 = vmatpush.bf16.msra.mxu2 %v846_v22  ;;  %v844_v26 = vld [vmem:[%s1165_s5 + $0x28] sm:$0xff]  ;;  %v843_v30 = vld [vmem:[%s1165_s5 + $0x20] sm:$0xff]  ;;  %v842_v41 = vld [vmem:[%s1165_s5 + $0x18] sm:$0xff] }
   0xe   :  { %136 = vmatpush.bf16.msra.mxu0 %v828_v2  ;;  %v841_v42 = vld [vmem:[%s1165_s5 + $0x10] sm:$0xff]  ;;  %v840_v43 = vld [vmem:[%s1165_s5 + $0x8] sm:$0xff]  ;;  %v839_v44 = vld [vmem:[%s1165_s5] sm:$0xff] }
   0xf   :  { %v854_v45 = vld [vmem:[%s1167_s7 + $0x38] sm:$0xff]  ;;  %v853_v47 = vld [vmem:[%s1167_s7 + $0x30] sm:$0xff]  ;;  %v891_v48 = vld [vmem:[%s1164_s4] ss:$0 sm:$0xff] }
  0x10   :  { %229 = vmatpush.bf16.msra.mxu1 %v836_v9  ;;  %413 = vmatpush.bf16.msra.mxu3 %v854_v45  ;;  %v852_v49 = vld [vmem:[%s1167_s7 + $0x28] sm:$0xff]  ;;  %v851_v53 = vld [vmem:[%s1167_s7 + $0x20] sm:$0xff]  ;;  %v850_v0 = vld [vmem:[%s1167_s7 + $0x18] sm:$0xff] }
  0x11   :  { %321 = vmatpush.bf16.msra.mxu2 %v845_v24  ;;  %v849_v1 = vld [vmem:[%s1167_s7 + $0x10] sm:$0xff]  ;;  %v848_v2 = vld [vmem:[%s1167_s7 + $0x8] sm:$0xff]  ;;  %v892_v7 = vld [vmem:[%s1166_s6] ss:$0 sm:$0xff] }
  0x12   :  { %137 = vmatpush.bf16.msra.mxu0 %v827_v3  ;;  %v847_v3 = vld [vmem:[%s1167_s7] sm:$0xff]  ;;  %v857_v24 = vld [vmem:[%s1169_s9 + $0x10] sm:$0xff] }
  0x13   :  { %v859_v12 = vld [vmem:[%s1169_s9 + $0x20] sm:$0xff] }
  0x14   :  { %230 = vmatpush.bf16.msra.mxu1 %v835_v13  ;;  %414 = vmatpush.bf16.msra.mxu3 %v853_v47  ;;  %v865_v47 = vld [vmem:[#allocation2 + $0x10] sm:$0xff] }
  0x15   :  { %322 = vmatpush.bf16.msra.mxu2 %v844_v26  ;;  %v855_v26 = vld [vmem:[%s1169_s9] sm:$0xff] }
  0x16   :  { %138 = vmatpush.bf16.msra.mxu0 %v826_v4  ;;  %v862_v4 = vld [vmem:[%s1169_s9 + $0x38] sm:$0xff] }
  0x18   :  { %231 = vmatpush.bf16.msra.mxu1 %v834_v18  ;;  %415 = vmatpush.bf16.msra.mxu3 %v852_v49  ;;  %v863_v49 = vld [vmem:[#allocation2] sm:$0xff] }
  0x19   :  { %323 = vmatpush.bf16.msra.mxu2 %v843_v30  ;;  %v893_v30 = vld [vmem:[%s1168_s8] ss:$0 sm:$0xff] }
  0x1a   :  { %139 = vmatpush.bf16.msra.mxu0 %v825_v6  ;;  %v861_v6 = vld [vmem:[%s1169_s9 + $0x30] sm:$0xff] }
  0x1c   :  { %232 = vmatpush.bf16.msra.mxu1 %v833_v19  ;;  %416 = vmatpush.bf16.msra.mxu3 %v851_v53 }
  0x1d   :  { %324 = vmatpush.bf16.msra.mxu2 %v842_v41 }
  0x1e   :  { %140 = vmatpush.bf16.msra.mxu0 %v824_v8  ;;  %v860_v8 = vld [vmem:[%s1169_s9 + $0x28] sm:$0xff] }
  0x20   :  { %233 = vmatpush.bf16.msra.mxu1 %v832_v20  ;;  %417 = vmatpush.bf16.msra.mxu3 %v850_v0 }
  0x21   :  { %325 = vmatpush.bf16.msra.mxu2 %v841_v42 }
  0x22   :  { %141 = vmatpush.bf16.msra.mxu0 %v823_v10 }
  0x24   :  { %234 = vmatpush.bf16.msra.mxu1 %v831_v21  ;;  %418 = vmatpush.bf16.msra.mxu3 %v849_v1  ;;  %v895_v1 = vld [vmem:[%s1172_s12] ss:$0 sm:$0xff] }
  0x25   :  { %142 = vmatmul.bf16.vlgmr.msra.gmra.mxu0 %v80_v14  ;;  %326 = vmatpush.bf16.msra.mxu2 %v840_v43 }
  0x26   :  { %506 = vmatpush.bf16.msrb.mxu0 %v862_v4 }
  0x28   :  { %419 = vmatpush.bf16.msra.mxu3 %v848_v2 }
  0x29   :  { %327 = vmatpush.bf16.msra.mxu2 %v839_v44 }
  0x2a   :  { %507 = vmatpush.bf16.msrb.mxu0 %v861_v6 }
  0x2c   :  { %420 = vmatpush.bf16.msra.mxu3 %v847_v3 }
  0x2d   :  { %871 = vmatpush.bf16.msrb.mxu2 %v862_v4 }
  0x2e   :  { %508 = vmatpush.bf16.msrb.mxu0 %v860_v8 }
  0x31   :  { %872 = vmatpush.bf16.msrb.mxu2 %v861_v6 }
  0x32   :  { %509 = vmatpush.bf16.msrb.mxu0 %v859_v12 }
  0x35   :  { %147 = vmatmul.bf16.gmra.mxu0 %v81_v17  ;;  %873 = vmatpush.bf16.msrb.mxu2 %v860_v8 }
  0x39   :  { %874 = vmatpush.bf16.msrb.mxu2 %v859_v12 }
  0xa2   :  { %v143_v23 = vpop.f32.mrf.mxu0 }
  0xa3   :  { %v144_v27 = vadd.f32 %v890_v25, %v143_v23  ;;  %v858_v23 = vld [vmem:[%s1169_s9 + $0x18] sm:$0xff] }
  0xa4   :  { %510 = vmatpush.bf16.msrb.mxu0 %v858_v23  ;;  %875 = vmatpush.bf16.msrb.mxu2 %v858_v23 }
  0xa5   :  { %v153_v31 = vmax.f32 %v144_v27, 0.0  ;;  %v870_v27 = vld [vmem:[#allocation2 + $0x38] sm:$0xff] }
  0xa6   :  { %599 = vmatpush.bf16.msrb.mxu1 %v870_v27  ;;  %879 = vmatpush.bf16.msrb.mxu3 %v870_v27 }
  0xa8   :  { %511 = vmatpush.bf16.msrb.mxu0 %v857_v24  ;;  %876 = vmatpush.bf16.msrb.mxu2 %v857_v24 }
  0xaa   :  { %v145_v28 = vpop.f32.mrf.mxu0 }
  0xab   :  { %v146_v29 = vadd.f32 %v890_v25, %v145_v28 }
  0xad   :  { %v154_v32 = vmax.f32 %v146_v29, 0.0  ;;  %v869_v29 = vld [vmem:[#allocation2 + $0x30] sm:$0xff] }
  0xae   :  { %600 = vmatpush.bf16.msrb.mxu1 %v869_v29  ;;  %880 = vmatpush.bf16.msrb.mxu3 %v869_v29 }
  0xaf   :  { %v173_v33 = vpack.c.bf16 %v154_v32, %v153_v31  ;;  %v868_v31 = vld [vmem:[#allocation2 + $0x28] sm:$0xff] }
  0xb1   :  { %235 = vmatmul.bf16.vlgmr.msra.gmra.mxu1 %v173_v33 }
  0xb2   :  { %v148_v34 = vpop.f32.mrf.mxu0  ;;  %601 = vmatpush.bf16.msrb.mxu1 %v868_v31  ;;  %881 = vmatpush.bf16.msrb.mxu3 %v868_v31 }
  0xb3   :  { %v149_v35 = vadd.f32 %v890_v25, %v148_v34 }
  0xb5   :  { %v155_v38 = vmax.f32 %v149_v35, 0.0  ;;  %v867_v35 = vld [vmem:[#allocation2 + $0x20] sm:$0xff] }
  0xb6   :  { %602 = vmatpush.bf16.msrb.mxu1 %v867_v35  ;;  %882 = vmatpush.bf16.msrb.mxu3 %v867_v35 }
  0xba   :  { %v150_v36 = vpop.f32.mrf.mxu0 }
  0xbb   :  { %v151_v37 = vadd.f32 %v890_v25, %v150_v36  ;;  %v856_v25 = vld [vmem:[%s1169_s9 + $0x8] sm:$0xff] }
  0xbc   :  { %512 = vmatpush.bf16.msrb.mxu0 %v856_v25  ;;  %877 = vmatpush.bf16.msrb.mxu2 %v856_v25 }
  0xbd   :  { %v156_v39 = vmax.f32 %v151_v37, 0.0 }
  0xbf   :  { %v174_v40 = vpack.c.bf16 %v156_v39, %v155_v38 }
  0xc0   :  { %513 = vmatpush.bf16.msrb.mxu0 %v855_v26  ;;  %878 = vmatpush.bf16.msrb.mxu2 %v855_v26 }
  0xc1   :  { %240 = vmatmul.bf16.gmra.mxu1 %v174_v40 }
 0x12e   :  { %v236_v46 = vpop.f32.mrf.mxu1 }
 0x12f   :  { %v237_v50 = vadd.f32 %v891_v48, %v236_v46  ;;  %v866_v46 = vld [vmem:[#allocation2 + $0x18] sm:$0xff] }
 0x130   :  { %603 = vmatpush.bf16.msrb.mxu1 %v866_v46  ;;  %883 = vmatpush.bf16.msrb.mxu3 %v866_v46 }
 0x131   :  { %v246_v54 = vmax.f32 %v237_v50, 0.0 }
 0x134   :  { %604 = vmatpush.bf16.msrb.mxu1 %v865_v47  ;;  %884 = vmatpush.bf16.msrb.mxu3 %v865_v47 }
 0x136   :  { %v238_v51 = vpop.f32.mrf.mxu1 }
 0x137   :  { %v239_v52 = vadd.f32 %v891_v48, %v238_v51  ;;  %v894_v51 = vld [vmem:[%s1170_s10] ss:$0 sm:$0xff] }
 0x139   :  { %v247_v55 = vmax.f32 %v239_v52, 0.0 }
 0x13b   :  { %v266_v56 = vpack.c.bf16 %v247_v55, %v246_v54 }
 0x13d   :  { %328 = vmatmul.bf16.vlgmr.msra.gmra.mxu2 %v266_v56 }
 0x13e   :  { %v241_v57 = vpop.f32.mrf.mxu1 }
 0x13f   :  { %v242_v58 = vadd.f32 %v891_v48, %v241_v57 }
 0x141   :  { %v248_v61 = vmax.f32 %v242_v58, 0.0 }
 0x146   :  { %v243_v59 = vpop.f32.mrf.mxu1 }
 0x147   :  { %v244_v60 = vadd.f32 %v891_v48, %v243_v59  ;;  %v864_v48 = vld [vmem:[#allocation2 + $0x8] sm:$0xff] }
 0x148   :  { %605 = vmatpush.bf16.msrb.mxu1 %v864_v48  ;;  %885 = vmatpush.bf16.msrb.mxu3 %v864_v48 }
 0x149   :  { %v249_v62 = vmax.f32 %v244_v60, 0.0 }
 0x14b   :  { %v267_v63 = vpack.c.bf16 %v249_v62, %v248_v61 }
 0x14c   :  { %606 = vmatpush.bf16.msrb.mxu1 %v863_v49  ;;  %886 = vmatpush.bf16.msrb.mxu3 %v863_v49 }
 0x14d   :  { %333 = vmatmul.bf16.gmra.mxu2 %v267_v63 }
 0x1c0   :  { %v329_v5 = vpop.f32.mrf.mxu2 }
 0x1c1   :  { %v330_v9 = vadd.f32 %v892_v7, %v329_v5 }
 0x1c3   :  { %v339_v13 = vmax.f32 %v330_v9, 0.0 }
 0x1c8   :  { %v331_v10 = vpop.f32.mrf.mxu2 }
 0x1c9   :  { %v332_v11 = vadd.f32 %v892_v7, %v331_v10 }
 0x1cb   :  { %v340_v14 = vmax.f32 %v332_v11, 0.0 }
 0x1cd   :  { %v359_v15 = vpack.c.bf16 %v340_v14, %v339_v13 }
 0x1cf   :  { %421 = vmatmul.bf16.vlgmr.msra.gmra.mxu3 %v359_v15 }
 0x1d0   :  { %v334_v16 = vpop.f32.mrf.mxu2 }
 0x1d1   :  { %v335_v17 = vadd.f32 %v892_v7, %v334_v16 }
 0x1d3   :  { %v341_v20 = vmax.f32 %v335_v17, 0.0 }
 0x1d8   :  { %v336_v18 = vpop.f32.mrf.mxu2 }
 0x1d9   :  { %v337_v19 = vadd.f32 %v892_v7, %v336_v18 }
 0x1db   :  { %v342_v21 = vmax.f32 %v337_v19, 0.0 }
 0x1dd   :  { %v360_v22 = vpack.c.bf16 %v342_v21, %v341_v20 }
 0x1df   :  { %426 = vmatmul.bf16.gmra.mxu3 %v360_v22 }
 0x252   :  { %v422_v28 = vpop.f32.mrf.mxu3 }
 0x253   :  { %v423_v32 = vadd.f32 %v893_v30, %v422_v28 }
 0x255   :  { %v432_v36 = vmax.f32 %v423_v32, 0.0 }
 0x25a   :  { %v424_v33 = vpop.f32.mrf.mxu3 }
 0x25b   :  { %v425_v34 = vadd.f32 %v893_v30, %v424_v33 }
 0x25d   :  { %v433_v37 = vmax.f32 %v425_v34, 0.0 }
 0x25f   :  { %v452_v38 = vpack.c.bf16 %v433_v37, %v432_v36 }
 0x261   :  { %514 = vmatmul.bf16.vlgmr.msrb.gmra.mxu0 %v452_v38 }
 0x262   :  { %v427_v39 = vpop.f32.mrf.mxu3 }
 0x263   :  { %v428_v40 = vadd.f32 %v893_v30, %v427_v39 }
 0x265   :  { %v434_v43 = vmax.f32 %v428_v40, 0.0 }
 0x26a   :  { %v429_v41 = vpop.f32.mrf.mxu3 }
 0x26b   :  { %v430_v42 = vadd.f32 %v893_v30, %v429_v41 }
 0x26d   :  { %v435_v44 = vmax.f32 %v430_v42, 0.0 }
 0x26f   :  { %v453_v45 = vpack.c.bf16 %v435_v44, %v434_v43 }
 0x271   :  { %519 = vmatmul.bf16.vlgmr.msrb.gmra.mxu2 %v453_v45 }
 0x2de   :  { %v515_v50 = vpop.f32.mrf.mxu0 }
 0x2df   :  { %v516_v52 = vadd.f32 %v894_v51, %v515_v50 }
 0x2e1   :  { %v525_v55 = vmax.f32 %v516_v52, 0.0 }
 0x2e6   :  { %v517_v53 = vpop.f32.mrf.mxu0 }
 0x2e7   :  { %v518_v54 = vadd.f32 %v894_v51, %v517_v53 }
 0x2e9   :  { %v526_v56 = vmax.f32 %v518_v54, 0.0 }
 0x2eb   :  { %v545_v57 = vpack.c.bf16 %v526_v56, %v525_v55 }
 0x2ed   :  { %607 = vmatmul.bf16.vlgmr.msrb.gmra.mxu1 %v545_v57 }
 0x2f4   :  { %v520_v58 = vpop.f32.mrf.mxu2 }
 0x2f5   :  { %v521_v59 = vadd.f32 %v894_v51, %v520_v58 }
 0x2f7   :  { %v527_v62 = vmax.f32 %v521_v59, 0.0 }
 0x2fc   :  { %v522_v60 = vpop.f32.mrf.mxu2 }
 0x2fd   :  { %v523_v61 = vadd.f32 %v894_v51, %v522_v60 }
 0x2ff   :  { %v528_v63 = vmax.f32 %v523_v61, 0.0 }
 0x301   :  { %v546_v0 = vpack.c.bf16 %v528_v63, %v527_v62 }
 0x303   :  { %612 = vmatmul.bf16.vlgmr.msrb.gmra.mxu3 %v546_v0 }
 0x36a   :  { %v608_v2 = vpop.f32.mrf.mxu1 }
 0x36b   :  { %v609_v3 = vadd.f32 %v895_v1, %v608_v2 }
 0x36d   :  { %v618_v4 = vmax.f32 %v609_v3, 0.0 }
 0x36f   :  { %622 = vst [vmem:[%s1173_s13] sm:$0xff] %v618_v4 }
 0x372   :  { %v610_v5 = vpop.f32.mrf.mxu1 }
 0x373   :  { %v611_v6 = vadd.f32 %v895_v1, %v610_v5 }
 0x375   :  { %v619_v7 = vmax.f32 %v611_v6, 0.0 }
 0x377   :  { %623 = vst [vmem:[%s1173_s13 + $0x8] sm:$0xff] %v619_v7 }
 0x386   :  { %v613_v8 = vpop.f32.mrf.mxu3 }
 0x387   :  { %v614_v9 = vadd.f32 %v895_v1, %v613_v8 }
 0x389   :  { %v620_v10 = vmax.f32 %v614_v9, 0.0 }
 0x38b   :  { %624 = vst [vmem:[%s1173_s13 + $0x10] sm:$0xff] %v620_v10 }
 0x38e   :  { %v615_v11 = vpop.f32.mrf.mxu3 }
 0x38f   :  { %v616_v12 = vadd.f32 %v895_v1, %v615_v11 }
 0x391   :  { %v621_v13 = vmax.f32 %v616_v12, 0.0 }
 0x393   :  { %625 = vst [vmem:[%s1173_s13 + $0x18] sm:$0xff] %v621_v13 }
 0x394   :  { %630 = vsyncpa [#allocation3], 1 }

</bundles_post_ra>
